<compile_context>
chip_gen: v7x
topology: tpu7x:2x2x1
jax: 0.10.0
libtpu: 0.0.40
codegen_flags: <defaults>
</compile_context>

<pallas_src>
import jax
import jax.numpy as jnp
from jax.experimental import pallas as pl
from jax.experimental.pallas import tpu as pltpu


def _gather_kernel(tok_ref, w_hbm, out_ref, sem):
    # tok_ref: (N_pad,) int32 in SMEM (scalar prefetch)
    # w_hbm:   (V, D) weight, left in HBM (memory_space=pl.ANY)
    # out_ref: (TILE_N, D) VMEM output block
    # sem:     (TILE_N,) DMA semaphores
    tile_n = out_ref.shape[0]
    base = pl.program_id(0) * tile_n

    @pl.loop(0, tile_n)
    def _start(j):
        row = tok_ref[base + j]
        pltpu.make_async_copy(
            w_hbm.at[pl.ds(row, 1)],
            out_ref.at[pl.ds(j, 1)],
            sem.at[j],
        ).start()

    @pl.loop(0, tile_n)
    def _wait(j):
        row = tok_ref[base + j]
        pltpu.make_async_copy(
            w_hbm.at[pl.ds(row, 1)],
            out_ref.at[pl.ds(j, 1)],
            sem.at[j],
        ).wait()


def _choose_tile_n(n):
    # Rows gathered per grid step: multiple of 8 (sublane tiling), capped at
    # 128 outstanding DMAs per step to amortize the ~0.35us/step overhead.
    t = 8
    while t < n and t < 128:
        t *= 2
    return t


@jax.jit
def embedding_forward(tokens, weight):
    """tokens: int array of any shape; weight: (V, D) float.

    Returns tokens.shape + (D,), matching torch.nn.functional.embedding
    (with the padding row zeroed at init time).
    """
    orig_shape = tokens.shape
    v, d = weight.shape

    tok_flat = tokens.reshape(-1).astype(jnp.int32)
    n = tok_flat.shape[0]
    # Clamp so an out-of-range id cannot trigger an out-of-bounds HBM DMA.
    tok_flat = jnp.clip(tok_flat, 0, v - 1)

    tile_n = _choose_tile_n(n)
    n_pad = ((n + tile_n - 1) // tile_n) * tile_n
    if n_pad != n:
        tok_flat = jnp.pad(tok_flat, (0, n_pad - n))  # pad ids are valid (0)

    out = pl.pallas_call(
        _gather_kernel,
        out_shape=jax.ShapeDtypeStruct((n_pad, d), weight.dtype),
        grid_spec=pltpu.PrefetchScalarGridSpec(
            num_scalar_prefetch=1,
            grid=(n_pad // tile_n,),
            in_specs=[
                # Weight stays in HBM; rows are gathered by manual DMA.
                pl.BlockSpec(memory_space=pl.ANY),
            ],
            out_specs=pl.BlockSpec((tile_n, d), lambda i, tok: (i, 0)),
            scratch_shapes=[pltpu.SemaphoreType.DMA((tile_n,))],
        ),
        compiler_params=pltpu.CompilerParams(
            dimension_semantics=("parallel",),
        ),
    )(tok_flat, weight)

    return out[:n].reshape(*orig_shape, d)


def make_embedding_weight(key, num_embeddings, embedding_dim, padding_index=None):
    # Mirrors torch.nn.init.xavier_uniform_ on a (V, D) matrix.
    limit = (6.0 / (num_embeddings + embedding_dim)) ** 0.5
    w = jax.random.uniform(
        key, (num_embeddings, embedding_dim),
        minval=-limit, maxval=limit, dtype=jnp.float32,
    )
    if padding_index is not None:
        w = w.at[padding_index].set(0.0)
    return w


if __name__ == "__main__":
    key = jax.random.PRNGKey(0)
    k_w, k_tok = jax.random.split(key)

    num_embeddings = 32   # vocab size
    embedding_dim = 32    # D
    padding_index = 0
    batch, seq = 2, 8

    weight = make_embedding_weight(k_w, num_embeddings, embedding_dim,
                                   padding_index=padding_index)
    tokens = jax.random.randint(k_tok, (batch, seq), 0, num_embeddings,
                                dtype=jnp.int32)

    out = embedding_forward(tokens, weight)
    out = jax.block_until_ready(out)

    # Reference check: plain JAX gather (same semantics as F.embedding with a
    # zeroed padding row).
    ref = weight[tokens]
    assert out.shape == (batch, seq, embedding_dim)
    assert jnp.allclose(out, ref, atol=1e-6), "mismatch vs reference gather"

    print("KERNEL_OK")
</pallas_src>

<mosaic_0001>
module attributes {stable_mosaic.version = 11 : i64} {
  func.func @_gather_kernel(%arg0: i32, %arg1: memref<16xi32, #tpu.memory_space<smem>>, %arg2: memref<32x32xf32, #tpu.memory_space<any>>, %arg3: memref<16x32xf32, #tpu.memory_space<vmem>>, %arg4: memref<16x!tpu.dma_semaphore, #tpu.memory_space<semaphore_mem>>) attributes {dimension_semantics = [#tpu.dimension_semantics<parallel>], iteration_bounds = array<i64: 1>, scalar_prefetch = 1 : i64, scratch_operands = 1 : i64, tpu.core_type = #tpu.core_type<tc>, window_params = [{}, {transform_indices = @transform_1, window_bounds = array<i64: 16, 32>}]} {
    %c16_i32 = arith.constant 16 : i32
    %0 = arith.muli %arg0, %c16_i32 : i32
    %c0_i32 = arith.constant 0 : i32
    %c16_i32_0 = arith.constant 16 : i32
    %1 = arith.addi %c0_i32, %c16_i32_0 : i32
    %c1_i32 = arith.constant 1 : i32
    scf.for %arg5 = %c0_i32 to %1 step %c1_i32  : i32 {
      %c1_i32_6 = arith.constant 1 : i32
      %3 = arith.muli %arg5, %c1_i32_6 : i32
      %c0_i32_7 = arith.constant 0 : i32
      %4 = arith.addi %c0_i32_7, %3 : i32
      %5 = arith.addi %0, %4 : i32
      %6 = arith.index_cast %5 : i32 to index
      %7 = memref.load %arg1[%6] : memref<16xi32, #tpu.memory_space<smem>>
      %c0_i32_8 = arith.constant 0 : i32
      %8 = tpu.memref_slice %arg2[%7, %c0_i32_8] : memref<32x32xf32, #tpu.memory_space<any>> -> memref<1x32xf32, #tpu.memory_space<any>>
      %c0_i32_9 = arith.constant 0 : i32
      %9 = tpu.memref_slice %arg3[%4, %c0_i32_9] : memref<16x32xf32, #tpu.memory_space<vmem>> -> memref<1x32xf32, #tpu.memory_space<vmem>>
      %10 = tpu.memref_slice %arg4[%4] : memref<16x!tpu.dma_semaphore, #tpu.memory_space<semaphore_mem>> -> memref<1x!tpu.dma_semaphore, #tpu.memory_space<semaphore_mem>>
      %11 = tpu.memref_squeeze %10 : memref<1x!tpu.dma_semaphore, #tpu.memory_space<semaphore_mem>> -> memref<!tpu.dma_semaphore, #tpu.memory_space<semaphore_mem>>
      tpu.enqueue_dma source(%8 : memref<1x32xf32, #tpu.memory_space<any>>) target(%9 : memref<1x32xf32, #tpu.memory_space<vmem>>) target_semaphore(%11 : memref<!tpu.dma_semaphore, #tpu.memory_space<semaphore_mem>>)
    }
    %c16_i32_1 = arith.constant 16 : i32
    %c0_i32_2 = arith.constant 0 : i32
    %c16_i32_3 = arith.constant 16 : i32
    %2 = arith.addi %c0_i32_2, %c16_i32_3 : i32
    %c1_i32_4 = arith.constant 1 : i32
    scf.for %arg5 = %c0_i32_2 to %2 step %c1_i32_4  : i32 {
      %c1_i32_6 = arith.constant 1 : i32
      %3 = arith.muli %arg5, %c1_i32_6 : i32
      %c0_i32_7 = arith.constant 0 : i32
      %4 = arith.addi %c0_i32_7, %3 : i32
      %5 = arith.addi %0, %4 : i32
      %6 = arith.index_cast %5 : i32 to index
      %7 = memref.load %arg1[%6] : memref<16xi32, #tpu.memory_space<smem>>
      %c0_i32_8 = arith.constant 0 : i32
      %8 = tpu.memref_slice %arg2[%7, %c0_i32_8] : memref<32x32xf32, #tpu.memory_space<any>> -> memref<1x32xf32, #tpu.memory_space<any>>
      %c0_i32_9 = arith.constant 0 : i32
      %9 = tpu.memref_slice %arg3[%4, %c0_i32_9] : memref<16x32xf32, #tpu.memory_space<vmem>> -> memref<1x32xf32, #tpu.memory_space<vmem>>
      %10 = tpu.memref_slice %arg4[%4] : memref<16x!tpu.dma_semaphore, #tpu.memory_space<semaphore_mem>> -> memref<1x!tpu.dma_semaphore, #tpu.memory_space<semaphore_mem>>
      %11 = tpu.memref_squeeze %10 : memref<1x!tpu.dma_semaphore, #tpu.memory_space<semaphore_mem>> -> memref<!tpu.dma_semaphore, #tpu.memory_space<semaphore_mem>>
      tpu.wait_dma2 semaphore(%11 : memref<!tpu.dma_semaphore, #tpu.memory_space<semaphore_mem>>) src(%8 : memref<1x32xf32, #tpu.memory_space<any>>) dst(%9 : memref<1x32xf32, #tpu.memory_space<vmem>>)
    }
    %c16_i32_5 = arith.constant 16 : i32
    return
  }
  func.func @transform_1(%arg0: i32, %arg1: memref<16xi32, #tpu.memory_space<smem>>) -> (i32, i32) {
    %c0_i32 = arith.constant 0 : i32
    %c0_i32_0 = arith.constant 0 : i32
    return %arg0, %c0_i32 : i32, i32
  }
}

</mosaic_0001>

<bundles_post_ra>
// kernel: embedding_forward.1
= control target key start
LH: loop header
LB: loop body
LE: loop exit
PB: predicated region body
PF: predicated region fallthrough
CT: control target
= control target key end

     0   :  { %s371_s0 = inlined_call_operand.vmem [shape: s32[16], index: 0, kind: input, shape index: {}]   ;;  %s372_s1 = inlined_call_operand.hbm [shape: f32[32,32], index: 1, kind: input, shape index: {}]   ;;  %s373_s2 = inlined_call_operand.hbm [shape: f32[16,32], index: 2, kind: output, shape index: {}]  }
   0x1   :  { %s7_s11 = sshll.u32 %s371_s0, 4  ;;  %s8_s11 = int_to_ptr.vmem [resolvable:$true] %s7_s11 }
   0x2   :  { %s229_s12 = scalar_lea.vmem %s8_s11, 16  ;;  %p234_p1 = scmp.lt.s32.totalorder %s8_s11, %s8_s11 }
   0x3   :  { %p230_p0 = scmp.ne.s32.totalorder %s8_s11, %s229_s12  ;;  %p235_p2 = scmp.lt.s32.totalorder %s229_s12, %s229_s12 }
   0x5   :  { %p236_p3 = por %p235_p2, %p234_p1 }
   0x7   :  { %p237_p4 = pnand %p236_p3, %p230_p0 }
   0x9   :  { %240 = shalt.err (!%p237_p4)  }
   0xa   :  { %s309_s13 = smov [#allocation4]  }
   0xb   :  { %10 = dma.vmem_to_smem %s8_s11, 16, %s309_s13, [#allocation3] }
   0xc   :  { %295 = dma.done.wait [#allocation3], 16 }
   0xd   :  { %296 = vsyncadd [#allocation3], 4294967280 }
   0xe   :  { %12 = sfence }
   0xf   :  { %13 = vsyncpa [#allocation6], 0  ;;  %s331_s14 = smov 0  }
  0x10 LB: > { %s22_s0 = sld [smem:[#allocation4 + %s303_s14]]  ;;  %s25_s15 = scalar_lea.vmem [#allocation5], %s303_s14  ;;  %s303_s14 = sphi %s331_s14, %s20_s14  }
  0x11   : > { %s34_s16 = sshll.u32 %s25_s15, 4  ;;  %s26_s21 = scalar_lea.sflag [#allocation2], %s303_s14  ;;  %s35_s16 = int_to_ptr.vmem [resolvable:$true] %s34_s16 }
  0x12   : > { %s243_s25 = scalar_lea.hbm %s372_s1, 512 }
  0x16   : > { %s192_s17 = sshll.u32 %s22_s0, 4 }
  0x17   : > { %s24_s20 = scalar_lea.hbm %s372_s1, %s192_s17 }
  0x18   : > { %s241_s22 = scalar_lea.hbm %s24_s20, 16  ;;  %p244_p6 = scmp.lt.u32.totalorder %s24_s20, %s372_s1 }
  0x19   : > { %p242_p5 = scmp.ne.s32.totalorder %s24_s20, %s241_s22  ;;  %p245_p7 = scmp.lt.u32.totalorder %s243_s25, %s241_s22 }
  0x1a   : > { %p247_p9 = scmp.lt.u32.totalorder %s241_s22, %s24_s20 }
  0x1b   : > { %p246_p8 = por %p245_p7, %p244_p6 }
  0x1d   : > { %p248_p10 = por %p247_p9, %p246_p8 }
  0x1f   : > { %p249_p11 = pnand %p248_p10, %p242_p5 }
  0x21   : > { %252 = shalt.err (!%p249_p11)  }
  0x22   : > { %s253_s28 = scalar_lea.vmem %s35_s16, 16  ;;  %s310_s29 = smov [#allocation5]  }
  0x23   : > { %p254_p12 = scmp.ne.s32.totalorder %s35_s16, %s253_s28  ;;  %s255_s30 = sshll.u32 %s310_s29, 4  ;;  %s348_s30 = int_to_ptr.vmem [resolvable:$false] %s255_s30 }
  0x24   : > { %s257_s3 = scalar_lea.vmem %s348_s30, 256  ;;  %p258_p13 = scmp.lt.s32.totalorder %s35_s16, %s348_s30 }
  0x25   : > { %p259_p0 = scmp.lt.s32.totalorder %s257_s3, %s253_s28 }
  0x27   : > { %p260_p1 = por %p259_p0, %p258_p13 }
  0x29   : > { %p261_p2 = pnand %p260_p1, %p254_p12 }
  0x2b   : > { %264 = shalt.err (!%p261_p2)  }
  0x2c   : > { %37 = dma.hbm_to_vmem [thread:$0]  %s24_s20, 16, %s35_s16, %s26_s21 }
  0x2d   : > { %s20_s14 = sadd.s32 1, %s303_s14  }
  0x2e   : > { %p17_p3 = scmp.ge.s32.totalorder %s20_s14, 16  }
  0x2f   :  { %s305_s4 = smov (%p17_p3), 0  }
  0x30   :  { %19 = sbr.rel (!%p17_p3) target bundleno = 16 (0x10), region = 57 }
  0x37 LB: > { %s46_s5 = scalar_lea.sflag [#allocation2], %s307_s4  ;;  %s307_s4 = sphi %s305_s4, %s43_s4  }
  0x38   : > { %297 = dma.done.wait %s46_s5, 16 }
  0x39   : > { %298 = vsyncadd %s46_s5, 4294967280  ;;  %s43_s4 = sadd.s32 1, %s307_s4  }
  0x3a   : > { %p40_p4 = scmp.ge.s32.totalorder %s43_s4, 16  }
  0x3b   :  { %p266_p5 = scmp.ne.s32.totalorder (%p40_p4), %s348_s30, %s257_s3  ;;  %p270_p6 = scmp.lt.s32.totalorder (%p40_p4), %s348_s30, %s348_s30 }
  0x3c   :  { %42 = sbr.rel (!%p40_p4) target bundleno = 55 (0x37), region = 68  ;;  %p271_p7 = scmp.lt.s32.totalorder (%p40_p4), %s257_s3, %s257_s3 }
  0x3e   :  { %p272_p8 = por (%p40_p4), %p271_p7, %p270_p6 }
  0x40   :  { %p273_p9 = pnand (%p40_p4), %p272_p8, %p266_p5 }
  0x43   :  { %276 = shalt.err (!%p273_p9)
}
  0x44   :  { %s277_s7 = scalar_lea.hbm %s373_s2, 256 }
  0x45   :  { %p278_p10 = scmp.ne.s32.totalorder %s373_s2, %s277_s7  ;;  %p281_p11 = scmp.lt.u32.totalorder %s277_s7, %s373_s2 }
  0x47   :  { %p283_p12 = pnand %p281_p11, %p278_p10 }
  0x49   :  { %286 = shalt.err (!%p283_p12)
}
  0x4a   :  { %s311_s12 = smov 128   ;;  %s312_s13 = smov 8  }
  0x4b   :  { %61 = dma.vmem_to_hbm [thread:$0]  %s348_s30, 256, %s373_s2, [#allocation6], %s311_s12, %s311_s12, %s312_s13  }
  0x4c   :  { %299 = dma.done.wait [#allocation6], 256  }
  0x4d   :  { %300 = vsyncadd [#allocation6], 4294967040 }
  0x4e   :  { %65 = vsyncpa [#allocation6], 1 }
  0x4f   :  { %66 = vsyncmov [#allocation2] }
  0x52   :  { %s67_s15 = vpop.sfrf %66 }
  0x53   :  { %p193_p13 = scmp.ne.s32.totalorder %s67_s15, 0 }
  0x55   :  { %71 = shalt.err (%p193_p13)  }
  0x56   :  { %73 = vsyncmov [#allocation2 + $0x1] }
  0x59   :  { %s74_s16 = vpop.sfrf %73 }
  0x5a   :  { %p194_p0 = scmp.ne.s32.totalorder %s74_s16, 0 }
  0x5c   :  { %78 = shalt.err (%p194_p0)  }
  0x5d   :  { %80 = vsyncmov [#allocation2 + $0x2] }
  0x60   :  { %s81_s17 = vpop.sfrf %80 }
  0x61   :  { %p195_p1 = scmp.ne.s32.totalorder %s81_s17, 0 }
  0x63   :  { %85 = shalt.err (%p195_p1)  }
  0x64   :  { %87 = vsyncmov [#allocation2 + $0x3] }
  0x67   :  { %s88_s18 = vpop.sfrf %87 }
  0x68   :  { %p196_p2 = scmp.ne.s32.totalorder %s88_s18, 0 }
  0x6a   :  { %92 = shalt.err (%p196_p2)  }
  0x6b   :  { %94 = vsyncmov [#allocation2 + $0x4] }
  0x6e   :  { %s95_s2 = vpop.sfrf %94 }
  0x6f   :  { %p197_p3 = scmp.ne.s32.totalorder %s95_s2, 0 }
  0x71   :  { %99 = shalt.err (%p197_p3)  }
  0x72   :  { %101 = vsyncmov [#allocation2 + $0x5] }
  0x75   :  { %s102_s19 = vpop.sfrf %101 }
  0x76   :  { %p198_p4 = scmp.ne.s32.totalorder %s102_s19, 0 }
  0x78   :  { %106 = shalt.err (%p198_p4)  }
  0x79   :  { %108 = vsyncmov [#allocation2 + $0x6] }
  0x7c   :  { %s109_s20 = vpop.sfrf %108 }
  0x7d   :  { %p199_p5 = scmp.ne.s32.totalorder %s109_s20, 0 }
  0x7f   :  { %113 = shalt.err (%p199_p5)  }
  0x80   :  { %115 = vsyncmov [#allocation2 + $0x7] }
  0x83   :  { %s116_s21 = vpop.sfrf %115 }
  0x84   :  { %p200_p6 = scmp.ne.s32.totalorder %s116_s21, 0 }
  0x86   :  { %120 = shalt.err (%p200_p6)  }
  0x87   :  { %122 = vsyncmov [#allocation2 + $0x8] }
  0x8a   :  { %s123_s22 = vpop.sfrf %122 }
  0x8b   :  { %p201_p7 = scmp.ne.s32.totalorder %s123_s22, 0 }
  0x8d   :  { %127 = shalt.err (%p201_p7)  }
  0x8e   :  { %129 = vsyncmov [#allocation2 + $0x9] }
  0x91   :  { %s130_s23 = vpop.sfrf %129 }
  0x92   :  { %p202_p8 = scmp.ne.s32.totalorder %s130_s23, 0 }
  0x94   :  { %134 = shalt.err (%p202_p8)  }
  0x95   :  { %136 = vsyncmov [#allocation2 + $0xa] }
  0x98   :  { %s137_s24 = vpop.sfrf %136 }
  0x99   :  { %p203_p9 = scmp.ne.s32.totalorder %s137_s24, 0 }
  0x9b   :  { %141 = shalt.err (%p203_p9)  }
  0x9c   :  { %143 = vsyncmov [#allocation2 + $0xb] }
  0x9f   :  { %s144_s25 = vpop.sfrf %143 }
  0xa0   :  { %p204_p10 = scmp.ne.s32.totalorder %s144_s25, 0 }
  0xa2   :  { %148 = shalt.err (%p204_p10)  }
  0xa3   :  { %150 = vsyncmov [#allocation2 + $0xc] }
  0xa6   :  { %s151_s26 = vpop.sfrf %150 }
  0xa7   :  { %p205_p11 = scmp.ne.s32.totalorder %s151_s26, 0 }
  0xa9   :  { %155 = shalt.err (%p205_p11)  }
  0xaa   :  { %157 = vsyncmov [#allocation2 + $0xd] }
  0xad   :  { %s158_s27 = vpop.sfrf %157 }
  0xae   :  { %p206_p12 = scmp.ne.s32.totalorder %s158_s27, 0 }
  0xb0   :  { %162 = shalt.err (%p206_p12)  }
  0xb1   :  { %164 = vsyncmov [#allocation2 + $0xe] }
  0xb4   :  { %s165_s28 = vpop.sfrf %164 }
  0xb5   :  { %p207_p13 = scmp.ne.s32.totalorder %s165_s28, 0 }
  0xb7   :  { %169 = shalt.err (%p207_p13)  }
  0xb8   :  { %171 = vsyncmov [#allocation2 + $0xf] }
  0xbb   :  { %s172_s29 = vpop.sfrf %171 }
  0xbc   :  { %p208_p0 = scmp.ne.s32.totalorder %s172_s29, 0 }
  0xbe   :  { %176 = shalt.err (%p208_p0)  }

</bundles_post_ra>
